<compile_context>
chip_gen: v5e
topology: v5e:2x2
jax: 0.10.0
libtpu: 0.0.40
codegen_flags: <defaults>
</compile_context>

<pallas_src>
import functools

import jax
import jax.numpy as jnp
from jax.experimental import pallas as pl
from jax.experimental.pallas import tpu as pltpu

EPSILON = 1e-10      # matches the PyTorch module's EPISILON
NORM_EPS = 1e-12     # F.normalize default eps

_FALLBACK_VMEM_BUDGET = 48 * 1024 * 1024   # safe on every generation (v7x: 64 MiB/TC)


def _round_up(x, m):
    return ((x + m - 1) // m) * m


def _vmem_budget_bytes():
    """~75% of this generation's VMEM: ~96 MiB on v5e/v6e, ~48 MiB on v7x."""
    try:
        cap = int(pltpu.get_tpu_info().vmem_capacity_bytes)
        if cap > 0:
            return (cap * 3) // 4
    except Exception:
        pass
    return _FALLBACK_VMEM_BUDGET


def _vmem_bytes_estimate(tq, n, d, feat_itemsize, resident_buffers):
    f32 = 4
    live_2d = 4 * tq * n * f32                       # ~4 live (TQ,N) tiles (e/pred, val, weight, eq)
    f1_tile = 2 * tq * d * feat_itemsize             # double-buffered streamed f1 tile
    f2_res = resident_buffers * n * d * feat_itemsize
    small = 16 * tq * f32 + 4 * n * f32              # (tq,1) vectors (dbl-buffered) + targets row
    return live_2d + f1_tile + f2_res + small


def _choose_block_rows(n, d, feat_itemsize, budget, resident_buffers):
    """Largest row tile (multiple of 8) whose working set fits the VMEM budget."""
    cap = _round_up(max(n, 8), 8)
    for tq in (1024, 512, 256, 128, 64, 32, 16, 8):
        if tq <= cap and _vmem_bytes_estimate(tq, n, d, feat_itemsize,
                                              resident_buffers) <= budget:
            return tq
    return 8


def _l2_normalize(x):
    """F.normalize(x, dim=1) == x / max(||x||, eps) == x * rsqrt(max(||x||^2, eps^2))."""
    sq = jnp.sum(x * x, axis=1, keepdims=True)
    return x * jax.lax.rsqrt(jnp.maximum(sq, NORM_EPS * NORM_EPS))


def _nce_kernel(f1_ref, f2_ref, tcol_ref, trow_ref, invp_ref, invn_ref, out_ref,
                *, inv_temperature, stable_softmax):
    # Inputs are pre-normalized, so cos[i,j] == f1n_i . f2n_j.  Contract the feature
    # dim of both operands directly on the MXU (no transpose materialized); bf16
    # inputs accumulate in f32 via preferred_element_type.
    logits = jax.lax.dot_general(
        f1_ref[...], f2_ref[...],
        dimension_numbers=(((1,), (1,)), ((), ())),
        preferred_element_type=jnp.float32) * inv_temperature          # (TQ, N) f32

    if stable_softmax:
        # Tiny temperatures: constant shift could underflow every exp -> use row max.
        shift = jnp.max(logits, axis=1, keepdims=True)                 # (TQ, 1) XLU
    else:
        # |cos| <= 1 -> logits in [-1/T, 1/T]; constant shift of 1/T keeps exp args
        # in [-2/T, 0] with no row-max reduction needed.
        shift = inv_temperature
    e = jnp.exp(logits - shift)                                        # (TQ, N) EUP
    rowsum = jnp.sum(e, axis=1, keepdims=True)                         # (TQ, 1) XLU
    pred = e * pl.reciprocal(rowsum, approx=False)                     # exact: feeds log()

    # Same-label (positive) entries: -log(pred + eps) / pos_count
    # Diff-label (negative) entries: -log(1 - pred + eps) / neg_count
    # One compare, two selects, one log, one row sum over the (TQ, N) tile.
    eq = tcol_ref[...] == trow_ref[...]                                # (TQ, N) int32 compare
    val = -jnp.log(jnp.where(eq, pred, 1.0 - pred) + EPSILON)
    weight = jnp.where(eq, invp_ref[...], invn_ref[...])               # (TQ,1) operands broadcast
    # NOTE: (tq, 1) output is a lane-1 block (minor vst.msk cost on v5e); kept for
    # layout simplicity since the output is tiny.
    out_ref[...] = jnp.sum(val * weight, axis=1, keepdims=True)        # (TQ, 1)


def nce_loss(f1, f2, targets, temperature=0.1, block_rows=None,
             matmul_dtype=jnp.bfloat16):
    """Pallas-TPU NCELoss forward. f1, f2: (N, D); targets: (N,). Returns scalar."""
    N, D = f1.shape
    assert f2.shape == (N, D) and targets.shape == (N,)

    # ---- wrapper-side prep: O(N*D) normalize + O(N log N) counts, no O(N^2) HBM op ----
    f1n = _l2_normalize(f1.astype(jnp.float32)).astype(matmul_dtype)
    f2n = _l2_normalize(f2.astype(jnp.float32)).astype(matmul_dtype)

    t = targets.astype(jnp.int32)
    sorted_t = jnp.sort(t)
    pos_count = (jnp.searchsorted(sorted_t, t, side="right")
                 - jnp.searchsorted(sorted_t, t, side="left")).astype(jnp.float32)
    inv_pos = (1.0 / pos_count).reshape(N, 1)
    # inf if every row shares one label -> 0*inf = NaN, matching the reference's 0/0.
    inv_neg = (1.0 / (jnp.float32(N) - pos_count)).reshape(N, 1)
    tcol = t.reshape(N, 1)
    trow = t.reshape(1, N)

    # ---- tiling ----
    feat_itemsize = jnp.dtype(matmul_dtype).itemsize
    budget = _vmem_budget_bytes()
    use_single_buffer = hasattr(pl, "Buffered")
    resident_buffers = 1 if use_single_buffer else 2

    if block_rows is None:
        tq = _choose_block_rows(N, D, feat_itemsize, budget, resident_buffers)
    else:
        tq = max(8, _round_up(int(block_rows), 8))

    n_pad = _round_up(N, tq)
    num_tiles = n_pad // tq
    if n_pad != N:
        pad = n_pad - N
        f1n = jnp.pad(f1n, ((0, pad), (0, 0)))
        tcol = jnp.pad(tcol, ((0, pad), (0, 0)))
        inv_pos = jnp.pad(inv_pos, ((0, pad), (0, 0)))   # zero weights -> pad rows finite
        inv_neg = jnp.pad(inv_neg, ((0, pad), (0, 0)))

    est = _vmem_bytes_estimate(tq, N, D, feat_itemsize, resident_buffers)
    vmem_limit = int(min(budget, max(2 * est, 16 * 1024 * 1024)))

    stable_softmax = float(temperature) < 0.05

    def build_call(resident_kwargs):
        in_specs = [
            pl.BlockSpec((tq, D), lambda i: (i, 0)),                    # f1n row tile (streamed)
            pl.BlockSpec((N, D), lambda i: (0, 0), **resident_kwargs),  # f2n (resident)
            pl.BlockSpec((tq, 1), lambda i: (i, 0)),                    # targets column slice
            pl.BlockSpec((1, N), lambda i: (0, 0), **resident_kwargs),  # targets row (resident)
            pl.BlockSpec((tq, 1), lambda i: (i, 0)),                    # 1 / positive count
            pl.BlockSpec((tq, 1), lambda i: (i, 0)),                    # 1 / negative count
        ]
        return pl.pallas_call(
            functools.partial(_nce_kernel,
                              inv_temperature=float(1.0 / temperature),
                              stable_softmax=stable_softmax),
            out_shape=jax.ShapeDtypeStruct((n_pad, 1), jnp.float32),
            grid=(num_tiles,),
            in_specs=in_specs,
            out_specs=pl.BlockSpec((tq, 1), lambda i: (i, 0)),
            compiler_params=pltpu.CompilerParams(
                dimension_semantics=("parallel",),       # independent row tiles
                vmem_limit_bytes=vmem_limit),
        )

    args = (f1n, f2n, tcol, trow, inv_pos, inv_neg)
    if use_single_buffer:
        try:
            # Constant-index resident operands: request a single pipeline buffer.
            row_losses = build_call({"pipeline_mode": pl.Buffered(1)})(*args)
        except Exception:
            # Fallback if this runtime rejects Buffered(1) (eager-call path only).
            row_losses = build_call({})(*args)
    else:
        row_losses = build_call({})(*args)

    return jnp.mean(row_losses[:N, 0])


def _nce_loss_ref(f1, f2, targets, temperature=0.1):
    """Pure-JAX reference mirroring the PyTorch module, for verification."""
    f1n = f1 / jnp.maximum(jnp.linalg.norm(f1, axis=1, keepdims=True), NORM_EPS)
    f2n = f2 / jnp.maximum(jnp.linalg.norm(f2, axis=1, keepdims=True), NORM_EPS)
    mask = targets[:, None] - targets[None, :]
    self_mask = (mask != 0).astype(jnp.float32)
    dist = jnp.sum((f1n[:, None, :] - f2n[None, :, :]) ** 2, axis=2)
    cos = 1.0 - 0.5 * dist
    pred = jax.nn.softmax(cos / temperature, axis=1)
    log_pos = -jnp.log(pred + EPSILON) * (1.0 - self_mask)
    log_neg = -jnp.log(1.0 - pred + EPSILON) * self_mask
    row = (log_pos.sum(1) / (1.0 - self_mask).sum(1)
           + log_neg.sum(1) / self_mask.sum(1))
    return row.mean()


if __name__ == "__main__":
    key = jax.random.PRNGKey(0)
    k1, k2, k3, k4 = jax.random.split(key, 4)

    # Case 1: N divisible by the tile; block_rows=8 exercises the multi-tile grid.
    N, D = 16, 32
    f1 = jax.random.normal(k1, (N, D), dtype=jnp.float32)
    f2 = jax.random.normal(k2, (N, D), dtype=jnp.float32)
    # Every label appears >= 2 times so every row has positives and negatives.
    targets = jnp.array([0, 0, 1, 1, 0, 1, 2, 2, 3, 3, 0, 2, 3, 1, 2, 3],
                        dtype=jnp.int32)

    ref = _nce_loss_ref(f1, f2, targets, temperature=0.1)

    # Default bf16-MXU path (loose tolerance vs f32 reference).
    loss_bf16 = nce_loss(f1, f2, targets, temperature=0.1, block_rows=8)
    jax.block_until_ready(loss_bf16)
    assert jnp.allclose(loss_bf16, ref, rtol=5e-2, atol=5e-2), (loss_bf16, ref)

    # f32-MXU validation path (tight tolerance).
    loss_f32 = nce_loss(f1, f2, targets, temperature=0.1, block_rows=8,
                        matmul_dtype=jnp.float32)
    jax.block_until_ready(loss_f32)
    assert jnp.allclose(loss_f32, ref, rtol=1e-4, atol=1e-4), (loss_f32, ref)

    # Case 2: non-divisible N exercises the padded-tail path (n_pad = 16, 2 tiles).
    N2, D2 = 12, 32
    f1b = jax.random.normal(k3, (N2, D2), dtype=jnp.float32)
    f2b = jax.random.normal(k4, (N2, D2), dtype=jnp.float32)
    targets_b = jnp.array([0, 0, 1, 1, 2, 2, 0, 1, 2, 3, 3, 3], dtype=jnp.int32)

    ref_b = _nce_loss_ref(f1b, f2b, targets_b, temperature=0.1)
    loss_b = nce_loss(f1b, f2b, targets_b, temperature=0.1, block_rows=8,
                      matmul_dtype=jnp.float32)
    jax.block_until_ready(loss_b)
    assert jnp.allclose(loss_b, ref_b, rtol=1e-4, atol=1e-4), (loss_b, ref_b)

    print("KERNEL_OK")
</pallas_src>

<mosaic_0001>
module attributes {stable_mosaic.version = 11 : i64} {
  func.func @_nce_kernel(%arg0: i32, %arg1: memref<8x32xbf16, #tpu.memory_space<vmem>>, %arg2: memref<16x32xbf16, #tpu.memory_space<vmem>>, %arg3: memref<8x1xi32, #tpu.memory_space<vmem>>, %arg4: memref<1x16xi32, #tpu.memory_space<vmem>>, %arg5: memref<8x1xf32, #tpu.memory_space<vmem>>, %arg6: memref<8x1xf32, #tpu.memory_space<vmem>>, %arg7: memref<8x1xf32, #tpu.memory_space<vmem>>) attributes {dimension_semantics = [#tpu.dimension_semantics<parallel>], iteration_bounds = array<i64: 2>, scalar_prefetch = 0 : i64, scratch_operands = 0 : i64, tpu.core_type = #tpu.core_type<tc>, window_params = [{transform_indices = @transform_0, window_bounds = array<i64: 8, 32>}, {pipeline_mode = #tpu.pipeline_mode<synchronous>, transform_indices = @transform_1, window_bounds = array<i64: 16, 32>}, {transform_indices = @transform_2, window_bounds = array<i64: 8, 1>}, {pipeline_mode = #tpu.pipeline_mode<synchronous>, transform_indices = @transform_3, window_bounds = array<i64: 1, 16>}, {transform_indices = @transform_4, window_bounds = array<i64: 8, 1>}, {transform_indices = @transform_5, window_bounds = array<i64: 8, 1>}, {transform_indices = @transform_6, window_bounds = array<i64: 8, 1>}]} {
    %c0 = arith.constant 0 : index
    %c0_0 = arith.constant 0 : index
    %0 = vector.load %arg1[%c0, %c0_0] : memref<8x32xbf16, #tpu.memory_space<vmem>>, vector<8x32xbf16>
    %c0_1 = arith.constant 0 : index
    %c0_2 = arith.constant 0 : index
    %1 = vector.load %arg2[%c0_1, %c0_2] : memref<16x32xbf16, #tpu.memory_space<vmem>>, vector<16x32xbf16>
    %cst = arith.constant dense<0.000000e+00> : vector<8x16xf32>
    %2 = tpu.matmul %0, %1, %cst {dimension_numbers = #tpu.dot_dimension_numbers<[1], [1], [0], [0], [0, 0, 1, 0], [], []>} : vector<8x32xbf16>, vector<16x32xbf16>, vector<8x16xf32> -> vector<8x16xf32>
    %cst_3 = arith.constant 1.000000e+01 : f32
    %3 = vector.broadcast %cst_3 : f32 to vector<8x16xf32>
    %4 = arith.mulf %2, %3 : vector<8x16xf32>
    %cst_4 = arith.constant 1.000000e+01 : f32
    %5 = vector.broadcast %cst_4 : f32 to vector<8x16xf32>
    %6 = arith.subf %4, %5 : vector<8x16xf32>
    %7 = math.exp %6 : vector<8x16xf32>
    %cst_5 = arith.constant dense<0.000000e+00> : vector<8xf32>
    %8 = vector.multi_reduction <add>, %7, %cst_5 [1] : vector<8x16xf32> to vector<8xf32>
    %9 = vector.shape_cast %8 : vector<8xf32> to vector<8x1xf32>
    %10 = tpu.reciprocal %9 : vector<8x1xf32> -> vector<8x1xf32>
    %11 = vector.broadcast %10 : vector<8x1xf32> to vector<8x16xf32>
    %12 = arith.mulf %7, %11 : vector<8x16xf32>
    %c0_6 = arith.constant 0 : index
    %c0_7 = arith.constant 0 : index
    %13 = vector.load %arg3[%c0_6, %c0_7] : memref<8x1xi32, #tpu.memory_space<vmem>>, vector<8x1xi32>
    %c0_8 = arith.constant 0 : index
    %c0_9 = arith.constant 0 : index
    %14 = vector.load %arg4[%c0_8, %c0_9] : memref<1x16xi32, #tpu.memory_space<vmem>>, vector<1x16xi32>
    %15 = vector.broadcast %13 : vector<8x1xi32> to vector<8x16xi32>
    %16 = vector.broadcast %14 : vector<1x16xi32> to vector<8x16xi32>
    %17 = arith.cmpi eq, %15, %16 : vector<8x16xi32>
    %cst_10 = arith.constant 1.000000e+00 : f32
    %18 = vector.broadcast %cst_10 : f32 to vector<8x16xf32>
    %19 = arith.subf %18, %12 : vector<8x16xf32>
    %20 = arith.select %17, %12, %19 : vector<8x16xi1>, vector<8x16xf32>
    %cst_11 = arith.constant 1.000000e-10 : f32
    %21 = vector.broadcast %cst_11 : f32 to vector<8x16xf32>
    %22 = arith.addf %20, %21 : vector<8x16xf32>
    %23 = math.log %22 : vector<8x16xf32>
    %cst_12 = arith.constant 0.000000e+00 : f32
    %24 = vector.broadcast %cst_12 : f32 to vector<8x16xf32>
    %25 = arith.subf %24, %23 : vector<8x16xf32>
    %c0_13 = arith.constant 0 : index
    %c0_14 = arith.constant 0 : index
    %26 = vector.load %arg5[%c0_13, %c0_14] : memref<8x1xf32, #tpu.memory_space<vmem>>, vector<8x1xf32>
    %c0_15 = arith.constant 0 : index
    %c0_16 = arith.constant 0 : index
    %27 = vector.load %arg6[%c0_15, %c0_16] : memref<8x1xf32, #tpu.memory_space<vmem>>, vector<8x1xf32>
    %28 = vector.shape_cast %26 : vector<8x1xf32> to vector<8x1xf32>
    %29 = vector.broadcast %28 : vector<8x1xf32> to vector<8x16xf32>
    %30 = vector.shape_cast %27 : vector<8x1xf32> to vector<8x1xf32>
    %31 = vector.broadcast %30 : vector<8x1xf32> to vector<8x16xf32>
    %32 = arith.select %17, %29, %31 : vector<8x16xi1>, vector<8x16xf32>
    %33 = arith.mulf %25, %32 : vector<8x16xf32>
    %cst_17 = arith.constant dense<0.000000e+00> : vector<8xf32>
    %34 = vector.multi_reduction <add>, %33, %cst_17 [1] : vector<8x16xf32> to vector<8xf32>
    %35 = vector.shape_cast %34 : vector<8xf32> to vector<8x1xf32>
    %c0_18 = arith.constant 0 : index
    %c0_19 = arith.constant 0 : index
    %36 = vector.load %arg7[%c0_18, %c0_19] : memref<8x1xf32, #tpu.memory_space<vmem>>, vector<8x1xf32>
    tpu.vector_store %arg7[%c0_18, %c0_19], %35 {strides = array<i32>} : memref<8x1xf32, #tpu.memory_space<vmem>>, vector<8x1xf32>,
    return
  }
  func.func @transform_0(%arg0: i32) -> (i32, i32) {
    %c0_i32 = arith.constant 0 : i32
    %c0_i32_0 = arith.constant 0 : i32
    return %arg0, %c0_i32 : i32, i32
  }
  func.func @transform_1(%arg0: i32) -> (i32, i32) {
    %c0_i32 = arith.constant 0 : i32
    %c0_i32_0 = arith.constant 0 : i32
    %c0_i32_1 = arith.constant 0 : i32
    return %c0_i32, %c0_i32_0 : i32, i32
  }
  func.func @transform_2(%arg0: i32) -> (i32, i32) {
    %c0_i32 = arith.constant 0 : i32
    %c0_i32_0 = arith.constant 0 : i32
    return %arg0, %c0_i32 : i32, i32
  }
  func.func @transform_3(%arg0: i32) -> (i32, i32) {
    %c0_i32 = arith.constant 0 : i32
    %c0_i32_0 = arith.constant 0 : i32
    %c0_i32_1 = arith.constant 0 : i32
    return %c0_i32, %c0_i32_0 : i32, i32
  }
  func.func @transform_4(%arg0: i32) -> (i32, i32) {
    %c0_i32 = arith.constant 0 : i32
    %c0_i32_0 = arith.constant 0 : i32
    return %arg0, %c0_i32 : i32, i32
  }
  func.func @transform_5(%arg0: i32) -> (i32, i32) {
    %c0_i32 = arith.constant 0 : i32
    %c0_i32_0 = arith.constant 0 : i32
    return %arg0, %c0_i32 : i32, i32
  }
  func.func @transform_6(%arg0: i32) -> (i32, i32) {
    %c0_i32 = arith.constant 0 : i32
    %c0_i32_0 = arith.constant 0 : i32
    return %arg0, %c0_i32 : i32, i32
  }
}

module attributes {stable_mosaic.version = 11 : i64} {
  func.func @_nce_kernel(%arg0: i32, %arg1: memref<8x32xbf16, #tpu.memory_space<vmem>>, %arg2: memref<16x32xbf16, #tpu.memory_space<vmem>>, %arg3: memref<8x1xi32, #tpu.memory_space<vmem>>, %arg4: memref<1x16xi32, #tpu.memory_space<vmem>>, %arg5: memref<8x1xf32, #tpu.memory_space<vmem>>, %arg6: memref<8x1xf32, #tpu.memory_space<vmem>>, %arg7: memref<8x1xf32, #tpu.memory_space<vmem>>) attributes {dimension_semantics = [#tpu.dimension_semantics<parallel>], iteration_bounds = array<i64: 2>, scalar_prefetch = 0 : i64, scratch_operands = 0 : i64, tpu.core_type = #tpu.core_type<tc>, window_params = [{transform_indices = @transform_0, window_bounds = array<i64: 8, 32>}, {pipeline_mode = #tpu.pipeline_mode<synchronous>, transform_indices = @transform_1, window_bounds = array<i64: 16, 32>}, {transform_indices = @transform_2, window_bounds = array<i64: 8, 1>}, {pipeline_mode = #tpu.pipeline_mode<synchronous>, transform_indices = @transform_3, window_bounds = array<i64: 1, 16>}, {transform_indices = @transform_4, window_bounds = array<i64: 8, 1>}, {transform_indices = @transform_5, window_bounds = array<i64: 8, 1>}, {transform_indices = @transform_6, window_bounds = array<i64: 8, 1>}]} {
    %c0 = arith.constant 0 : index
    %c0_0 = arith.constant 0 : index
    %0 = vector.load %arg1[%c0, %c0_0] : memref<8x32xbf16, #tpu.memory_space<vmem>>, vector<8x32xbf16>
    %c0_1 = arith.constant 0 : index
    %c0_2 = arith.constant 0 : index
    %1 = vector.load %arg2[%c0_1, %c0_2] : memref<16x32xbf16, #tpu.memory_space<vmem>>, vector<16x32xbf16>
    %cst = arith.constant dense<0.000000e+00> : vector<8x16xf32>
    %2 = tpu.matmul %0, %1, %cst {dimension_numbers = #tpu.dot_dimension_numbers<[1], [1], [0], [0], [0, 0, 1, 0], [], []>} : vector<8x32xbf16>, vector<16x32xbf16>, vector<8x16xf32> -> vector<8x16xf32>
    %cst_3 = arith.constant 1.000000e+01 : f32
    %3 = vector.broadcast %cst_3 : f32 to vector<8x16xf32>
    %4 = arith.mulf %2, %3 : vector<8x16xf32>
    %cst_4 = arith.constant 1.000000e+01 : f32
    %5 = vector.broadcast %cst_4 : f32 to vector<8x16xf32>
    %6 = arith.subf %4, %5 : vector<8x16xf32>
    %7 = math.exp %6 : vector<8x16xf32>
    %cst_5 = arith.constant dense<0.000000e+00> : vector<8xf32>
    %8 = vector.multi_reduction <add>, %7, %cst_5 [1] : vector<8x16xf32> to vector<8xf32>
    %9 = vector.shape_cast %8 : vector<8xf32> to vector<8x1xf32>
    %10 = tpu.reciprocal %9 : vector<8x1xf32> -> vector<8x1xf32>
    %11 = vector.broadcast %10 : vector<8x1xf32> to vector<8x16xf32>
    %12 = arith.mulf %7, %11 : vector<8x16xf32>
    %c0_6 = arith.constant 0 : index
    %c0_7 = arith.constant 0 : index
    %13 = vector.load %arg3[%c0_6, %c0_7] : memref<8x1xi32, #tpu.memory_space<vmem>>, vector<8x1xi32>
    %c0_8 = arith.constant 0 : index
    %c0_9 = arith.constant 0 : index
    %14 = vector.load %arg4[%c0_8, %c0_9] : memref<1x16xi32, #tpu.memory_space<vmem>>, vector<1x16xi32>
    %15 = vector.broadcast %13 : vector<8x1xi32> to vector<8x16xi32>
    %16 = vector.broadcast %14 : vector<1x16xi32> to vector<8x16xi32>
    %17 = arith.cmpi eq, %15, %16 : vector<8x16xi32>
    %cst_10 = arith.constant 1.000000e+00 : f32
    %18 = vector.broadcast %cst_10 : f32 to vector<8x16xf32>
    %19 = arith.subf %18, %12 : vector<8x16xf32>
    %20 = arith.select %17, %12, %19 : vector<8x16xi1>, vector<8x16xf32>
    %cst_11 = arith.constant 1.000000e-10 : f32
    %21 = vector.broadcast %cst_11 : f32 to vector<8x16xf32>
    %22 = arith.addf %20, %21 : vector<8x16xf32>
    %23 = math.log %22 : vector<8x16xf32>
    %cst_12 = arith.constant 0.000000e+00 : f32
    %24 = vector.broadcast %cst_12 : f32 to vector<8x16xf32>
    %25 = arith.subf %24, %23 : vector<8x16xf32>
    %c0_13 = arith.constant 0 : index
    %c0_14 = arith.constant 0 : index
    %26 = vector.load %arg5[%c0_13, %c0_14] : memref<8x1xf32, #tpu.memory_space<vmem>>, vector<8x1xf32>
    %c0_15 = arith.constant 0 : index
    %c0_16 = arith.constant 0 : index
    %27 = vector.load %arg6[%c0_15, %c0_16] : memref<8x1xf32, #tpu.memory_space<vmem>>, vector<8x1xf32>
    %28 = vector.shape_cast %26 : vector<8x1xf32> to vector<8x1xf32>
    %29 = vector.broadcast %28 : vector<8x1xf32> to vector<8x16xf32>
    %30 = vector.shape_cast %27 : vector<8x1xf32> to vector<8x1xf32>
    %31 = vector.broadcast %30 : vector<8x1xf32> to vector<8x16xf32>
    %32 = arith.select %17, %29, %31 : vector<8x16xi1>, vector<8x16xf32>
    %33 = arith.mulf %25, %32 : vector<8x16xf32>
    %cst_17 = arith.constant dense<0.000000e+00> : vector<8xf32>
    %34 = vector.multi_reduction <add>, %33, %cst_17 [1] : vector<8x16xf32> to vector<8xf32>
    %35 = vector.shape_cast %34 : vector<8xf32> to vector<8x1xf32>
    %c0_18 = arith.constant 0 : index
    %c0_19 = arith.constant 0 : index
    %36 = vector.load %arg7[%c0_18, %c0_19] : memref<8x1xf32, #tpu.memory_space<vmem>>, vector<8x1xf32>
    tpu.vector_store %arg7[%c0_18, %c0_19], %35 {strides = array<i32>} : memref<8x1xf32, #tpu.memory_space<vmem>>, vector<8x1xf32>,
    return
  }
  func.func @transform_0(%arg0: i32) -> (i32, i32) {
    %c0_i32 = arith.constant 0 : i32
    %c0_i32_0 = arith.constant 0 : i32
    return %arg0, %c0_i32 : i32, i32
  }
  func.func @transform_1(%arg0: i32) -> (i32, i32) {
    %c0_i32 = arith.constant 0 : i32
    %c0_i32_0 = arith.constant 0 : i32
    %c0_i32_1 = arith.constant 0 : i32
    return %c0_i32, %c0_i32_0 : i32, i32
  }
  func.func @transform_2(%arg0: i32) -> (i32, i32) {
    %c0_i32 = arith.constant 0 : i32
    %c0_i32_0 = arith.constant 0 : i32
    return %arg0, %c0_i32 : i32, i32
  }
  func.func @transform_3(%arg0: i32) -> (i32, i32) {
    %c0_i32 = arith.constant 0 : i32
    %c0_i32_0 = arith.constant 0 : i32
    %c0_i32_1 = arith.constant 0 : i32
    return %c0_i32, %c0_i32_0 : i32, i32
  }
  func.func @transform_4(%arg0: i32) -> (i32, i32) {
    %c0_i32 = arith.constant 0 : i32
    %c0_i32_0 = arith.constant 0 : i32
    return %arg0, %c0_i32 : i32, i32
  }
  func.func @transform_5(%arg0: i32) -> (i32, i32) {
    %c0_i32 = arith.constant 0 : i32
    %c0_i32_0 = arith.constant 0 : i32
    return %arg0, %c0_i32 : i32, i32
  }
  func.func @transform_6(%arg0: i32) -> (i32, i32) {
    %c0_i32 = arith.constant 0 : i32
    %c0_i32_0 = arith.constant 0 : i32
    return %arg0, %c0_i32 : i32, i32
  }
}

</mosaic_0001>

<bundles_post_ra>
// kernel: tpu_custom_call.1
= control target key start
LH: loop header
LB: loop body
LE: loop exit
PB: predicated region body
PF: predicated region fallthrough
CT: control target
= control target key end

     0   :  { %s552_s21 = smov 0   ;;  %s592_s0 = inlined_call_operand.vmem [shape: bf16[16,32], index: 0, kind: input, shape index: {}]   ;;  %s593_s1 = inlined_call_operand.vmem [shape: bf16[16,32], index: 1, kind: input, shape index: {}]   ;;  %s594_s2 = inlined_call_operand.vmem [shape: s32[16,1], index: 2, kind: input, shape index: {}]   ;;  %s595_s3 = inlined_call_operand.vmem [shape: s32[1,16], index: 3, kind: input, shape index: {}]   ;;  %s596_s4 = inlined_call_operand.vmem [shape: f32[16,1], index: 4, kind: input, shape index: {}]   ;;  %s597_s5 = inlined_call_operand.vmem [shape: f32[16,1], index: 5, kind: input, shape index: {}]   ;;  %s598_s6 = inlined_call_operand.vmem [shape: f32[16,1], index: 6, kind: output, shape index: {}]  }
   0x1 LB: > { %s471_s22 = sadd.s32 4294967295, %s514_s21   ;;  %p475_p0 = scmp.ge.s32.totalorder %s514_s21, 1  ;;  %s514_s21 = sphi %s552_s21, %s16_s21  }
   0x2   : > { %p238_p1 = scmp.lt.s32.totalorder %s514_s21, 3 }
   0x4   : > { %p239_p2 = pnand %p475_p0, %p238_p1 }
   0x5   : > { %p278_p3 = scmp.lt.s32.totalorder (!%p239_p2), %s471_s22, 1 }
   0x6   : > { %242 = sbr.rel (%p239_p2) target bundleno = 431 (0x1af), region = 44 }
   0xb   : > { %v489_v0 = vld [vmem:[%s593_s1] sm:$0xff]  ;;  %vm307_vm0 = vcmask 261120   ;;  %s600_s22 = smov (!%p278_p3, %s471_s22), 1  ;;  %v516_v4 = vmov 0   ;;  %vm331_vm1 = vcmask 130048   ;;  %vm380_vm7 = vcmask 7168  }
   0xc   : > { %v312_v1 = vsel %vm307_vm0, %v489_v0, 0  ;;  %s476_s25 = sshll.u32 %s600_s22, 2  ;;  %s566_s29 = sshll.u32 %s600_s22, 3  ;;  %500 = vset.pattern.permute.xlu1 %v516_v4  ;;  %499 = vset.pattern.permute.xlu0 %v516_v4  ;;  %v501_v24 = vld [vmem:[%s595_s3] ss:$0 sm:$0xff] }
   0xd   : > { %321 = vmatpush.bf16.xpose.msra.mxu0 %v312_v1  ;;  %s281_s28 = scalar_lea.vmem %s592_s0, %s476_s25  ;;  %s289_s8 = scalar_lea.vmem %s596_s4, %s566_s29 }
   0xe   : > { %v299_v2 = vld [vmem:[%s281_s28] sm:$0xf]  ;;  %s293_s11 = scalar_lea.vmem %s597_s5, %s566_s29  ;;  %s285_s14 = scalar_lea.vmem %s594_s2, %s566_s29 }
   0xf   : > { %v363_v3 = vld [vmem:[%s289_s8] sm:$0xff]  ;;  %s297_s19 = scalar_lea.vmem %s598_s6, %s566_s29 }
  0x10   : > { %367 = vperm.xlu1 %500, %v363_v3   ;;  %v364_v8 = vld [vmem:[%s293_s11] sm:$0xff] }
  0x11   : > { %v350_v13 = vld [vmem:[%s285_s14] sm:$0xff] }
  0x14   : > { %485 = vmatmul.msk.bf16.vlgmr.msra.gmra.mxu0 %vm307_vm0, %v299_v2 }
  0x18   : > { %372 = vperm.xlu1 %500, %v364_v8  }
  0x82   : > { %v368_v29 = vpop.permute.xlu1 %367 }
  0x8a   : > { %v373_v33 = vpop.permute.xlu1 %372 }
  0x91   : > { %v323_v5 = vpop.f32.mrf.mxu0 }
  0x92   : > { %v327_v6 = vmul.f32 10.0, %v323_v5 }
  0x94   : > { %v486_v7 = vadd.f32 -10.0, %v327_v6 }
  0x96   : > { %v329_v9 = vmul.f32 1.442695, %v486_v7 }
  0x98   : > { %502 = vpow2.f32 %v329_v9 }
  0x99   : > { %v325_v10 = vpop.f32.mrf.mxu0 }
  0x9e   : > { %v503_v11 = vpop.eup %502 }
  0x9f   : > { %v332_v12 = vsel %vm331_vm1, %v503_v11, 0.0 }
  0xa0   : > { %333 = vadd.xlane.f32.xlu0 %v332_v12 }
  0xb4   : > { %353 = vperm.xlu0 %499, %v350_v13  }
 0x113   : > { %v334_v14 = vpop.xlane.xlu0 %333 }
 0x114   : > { %504 = vrcp.f32 %v334_v14  ;;  %v346_v18 = vand.u32 2147483648, %v334_v14  ;;  %v344_v20 = vand.u32 2147483647, %v334_v14  ;;  %vm340_vm3 = vweird.f32 %v334_v14 }
 0x116   : > { %v347_v22 = vor.u32 1.1754944e-38, %v346_v18  ;;  %vm345_vm5 = vcmp.eq.f32.partialorder %v344_v20, 8.507059e+37 }
 0x11a   : > { %v505_v15 = vpop.eup %504 }
 0x11b   : > { %v336_v16 = vmul.f32 %v505_v15, %v334_v14  ;;  %vm341_vm2 = vweird.f32 %v505_v15 }
 0x11c   : > { %vm342_vm4 = vmor %vm340_vm3, %vm341_vm2 }
 0x11d   : > { %v337_v17 = vsub.f32 1.0, %v336_v16 }
 0x11f   : > { %v338_v19 = vmul.f32 %v505_v15, %v337_v17 }
 0x121   : > { %v339_v21 = vadd.f32 %v505_v15, %v338_v19 }
 0x123   : > { %v343_v23 = vsel %vm342_vm4, %v505_v15, %v339_v21 }
 0x124   : > { %v348_v25 = vsel %vm345_vm5, %v347_v22, %v343_v23 }
 0x125   : > { %v349_v26 = vmul.f32 %v503_v11, %v348_v25 }
 0x126   : > { %v354_v27 = vpop.permute.xlu0 %353 }
 0x127   : > { %v357_v28 = vsub.f32 1.0, %v349_v26  ;;  %vm356_vm6 = vcmp.eq.s32.totalorder %v354_v27, %v501_v24 }
 0x128   : > { %v375_v36 = vsel %vm356_vm6, %v368_v29, %v373_v33 }
 0x129   : > { %v358_v30 = vsel %vm356_vm6, %v349_v26, %v357_v28 }
 0x12a   : > { %v359_v31 = vadd.f32 1e-10, %v358_v30 }
 0x12c   : > { %506 = vlog2.f32 %v359_v31 }
 0x132   : > { %v507_v32 = vpop.eup %506 }
 0x133   : > { %v361_v34 = vmul.f32 0.6931472, %v507_v32 }
 0x135   : > { %v362_v35 = vsub.f32 0.0, %v361_v34 }
 0x137   : > { %v376_v37 = vmul.f32 %v375_v36, %v362_v35 }
 0x139   : > { %v377_v38 = vsel %vm331_vm1, %v376_v37, 0.0 }
 0x13a   : > { %378 = vadd.xlane.f32.xlu2 %v377_v38 }
 0x1ad   : > { %v379_v39 = vpop.xlane.xlu2 %378 }
 0x1ae   : > { %381 = vst.msk [vmem:[%s297_s19] sm:$0xff] %vm380_vm7, %v379_v39 }
 0x1af PF: > { %s16_s21 = sadd.s32 1, %s514_s21  }
 0x1b0   : > { %p13_p4 = scmp.ge.s32.totalorder %s16_s21, 4  }
 0x1b2   :  { %15 = sbr.rel (!%p13_p4) target bundleno = 1 (0x1), region = 83 }

// kernel: tpu_custom_call.1
= control target key start
LH: loop header
LB: loop body
LE: loop exit
PB: predicated region body
PF: predicated region fallthrough
CT: control target
= control target key end

     0   :  { %s552_s21 = smov 0   ;;  %s592_s0 = inlined_call_operand.vmem [shape: bf16[16,32], index: 0, kind: input, shape index: {}]   ;;  %s593_s1 = inlined_call_operand.vmem [shape: bf16[16,32], index: 1, kind: input, shape index: {}]   ;;  %s594_s2 = inlined_call_operand.vmem [shape: s32[16,1], index: 2, kind: input, shape index: {}]   ;;  %s595_s3 = inlined_call_operand.vmem [shape: s32[1,16], index: 3, kind: input, shape index: {}]   ;;  %s596_s4 = inlined_call_operand.vmem [shape: f32[16,1], index: 4, kind: input, shape index: {}]   ;;  %s597_s5 = inlined_call_operand.vmem [shape: f32[16,1], index: 5, kind: input, shape index: {}]   ;;  %s598_s6 = inlined_call_operand.vmem [shape: f32[16,1], index: 6, kind: output, shape index: {}]  }
   0x1 LB: > { %s471_s22 = sadd.s32 4294967295, %s514_s21   ;;  %p475_p0 = scmp.ge.s32.totalorder %s514_s21, 1  ;;  %s514_s21 = sphi %s552_s21, %s16_s21  }
   0x2   : > { %p238_p1 = scmp.lt.s32.totalorder %s514_s21, 3 }
   0x4   : > { %p239_p2 = pnand %p475_p0, %p238_p1 }
   0x5   : > { %p278_p3 = scmp.lt.s32.totalorder (!%p239_p2), %s471_s22, 1 }
   0x6   : > { %242 = sbr.rel (%p239_p2) target bundleno = 431 (0x1af), region = 44 }
   0xb   : > { %v489_v0 = vld [vmem:[%s593_s1] sm:$0xff]  ;;  %vm307_vm0 = vcmask 261120   ;;  %s600_s22 = smov (!%p278_p3, %s471_s22), 1  ;;  %v516_v4 = vmov 0   ;;  %vm331_vm1 = vcmask 130048   ;;  %vm380_vm7 = vcmask 7168  }
   0xc   : > { %v312_v1 = vsel %vm307_vm0, %v489_v0, 0  ;;  %s476_s25 = sshll.u32 %s600_s22, 2  ;;  %s566_s29 = sshll.u32 %s600_s22, 3  ;;  %500 = vset.pattern.permute.xlu1 %v516_v4  ;;  %499 = vset.pattern.permute.xlu0 %v516_v4  ;;  %v501_v24 = vld [vmem:[%s595_s3] ss:$0 sm:$0xff] }
   0xd   : > { %321 = vmatpush.bf16.xpose.msra.mxu0 %v312_v1  ;;  %s281_s28 = scalar_lea.vmem %s592_s0, %s476_s25  ;;  %s289_s8 = scalar_lea.vmem %s596_s4, %s566_s29 }
   0xe   : > { %v299_v2 = vld [vmem:[%s281_s28] sm:$0xf]  ;;  %s293_s11 = scalar_lea.vmem %s597_s5, %s566_s29  ;;  %s285_s14 = scalar_lea.vmem %s594_s2, %s566_s29 }
   0xf   : > { %v363_v3 = vld [vmem:[%s289_s8] sm:$0xff]  ;;  %s297_s19 = scalar_lea.vmem %s598_s6, %s566_s29 }
  0x10   : > { %367 = vperm.xlu1 %500, %v363_v3   ;;  %v364_v8 = vld [vmem:[%s293_s11] sm:$0xff] }
  0x11   : > { %v350_v13 = vld [vmem:[%s285_s14] sm:$0xff] }
  0x14   : > { %485 = vmatmul.msk.bf16.vlgmr.msra.gmra.mxu0 %vm307_vm0, %v299_v2 }
  0x18   : > { %372 = vperm.xlu1 %500, %v364_v8  }
  0x82   : > { %v368_v29 = vpop.permute.xlu1 %367 }
  0x8a   : > { %v373_v33 = vpop.permute.xlu1 %372 }
  0x91   : > { %v323_v5 = vpop.f32.mrf.mxu0 }
  0x92   : > { %v327_v6 = vmul.f32 10.0, %v323_v5 }
  0x94   : > { %v486_v7 = vadd.f32 -10.0, %v327_v6 }
  0x96   : > { %v329_v9 = vmul.f32 1.442695, %v486_v7 }
  0x98   : > { %502 = vpow2.f32 %v329_v9 }
  0x99   : > { %v325_v10 = vpop.f32.mrf.mxu0 }
  0x9e   : > { %v503_v11 = vpop.eup %502 }
  0x9f   : > { %v332_v12 = vsel %vm331_vm1, %v503_v11, 0.0 }
  0xa0   : > { %333 = vadd.xlane.f32.xlu0 %v332_v12 }
  0xb4   : > { %353 = vperm.xlu0 %499, %v350_v13  }
 0x113   : > { %v334_v14 = vpop.xlane.xlu0 %333 }
 0x114   : > { %504 = vrcp.f32 %v334_v14  ;;  %v346_v18 = vand.u32 2147483648, %v334_v14  ;;  %v344_v20 = vand.u32 2147483647, %v334_v14  ;;  %vm340_vm3 = vweird.f32 %v334_v14 }
 0x116   : > { %v347_v22 = vor.u32 1.1754944e-38, %v346_v18  ;;  %vm345_vm5 = vcmp.eq.f32.partialorder %v344_v20, 8.507059e+37 }
 0x11a   : > { %v505_v15 = vpop.eup %504 }
 0x11b   : > { %v336_v16 = vmul.f32 %v505_v15, %v334_v14  ;;  %vm341_vm2 = vweird.f32 %v505_v15 }
 0x11c   : > { %vm342_vm4 = vmor %vm340_vm3, %vm341_vm2 }
 0x11d   : > { %v337_v17 = vsub.f32 1.0, %v336_v16 }
 0x11f   : > { %v338_v19 = vmul.f32 %v505_v15, %v337_v17 }
 0x121   : > { %v339_v21 = vadd.f32 %v505_v15, %v338_v19 }
 0x123   : > { %v343_v23 = vsel %vm342_vm4, %v505_v15, %v339_v21 }
 0x124   : > { %v348_v25 = vsel %vm345_vm5, %v347_v22, %v343_v23 }
 0x125   : > { %v349_v26 = vmul.f32 %v503_v11, %v348_v25 }
 0x126   : > { %v354_v27 = vpop.permute.xlu0 %353 }
 0x127   : > { %v357_v28 = vsub.f32 1.0, %v349_v26  ;;  %vm356_vm6 = vcmp.eq.s32.totalorder %v354_v27, %v501_v24 }
 0x128   : > { %v375_v36 = vsel %vm356_vm6, %v368_v29, %v373_v33 }
 0x129   : > { %v358_v30 = vsel %vm356_vm6, %v349_v26, %v357_v28 }
 0x12a   : > { %v359_v31 = vadd.f32 1e-10, %v358_v30 }
 0x12c   : > { %506 = vlog2.f32 %v359_v31 }
 0x132   : > { %v507_v32 = vpop.eup %506 }
 0x133   : > { %v361_v34 = vmul.f32 0.6931472, %v507_v32 }
 0x135   : > { %v362_v35 = vsub.f32 0.0, %v361_v34 }
 0x137   : > { %v376_v37 = vmul.f32 %v375_v36, %v362_v35 }
 0x139   : > { %v377_v38 = vsel %vm331_vm1, %v376_v37, 0.0 }
 0x13a   : > { %378 = vadd.xlane.f32.xlu2 %v377_v38 }
 0x1ad   : > { %v379_v39 = vpop.xlane.xlu2 %378 }
 0x1ae   : > { %381 = vst.msk [vmem:[%s297_s19] sm:$0xff] %vm380_vm7, %v379_v39 }
 0x1af PF: > { %s16_s21 = sadd.s32 1, %s514_s21  }
 0x1b0   : > { %p13_p4 = scmp.ge.s32.totalorder %s16_s21, 4  }
 0x1b2   :  { %15 = sbr.rel (!%p13_p4) target bundleno = 1 (0x1), region = 83 }

</bundles_post_ra>
